<compile_context>
chip_gen: v7x
topology: tpu7x:2x2x1
jax: 0.10.0
libtpu: 0.0.40
codegen_flags: <defaults>
</compile_context>

<pallas_src>
import math

import jax
import jax.numpy as jnp
from jax import lax
from jax.experimental import pallas as pl
from jax.experimental.pallas import tpu as pltpu

# ---------------------------------------------------------------------------
# Model dimensions (small, consistent with the module's forward)
# ---------------------------------------------------------------------------
SEQ = 8          # sequence length
BATCH = 2        # batch size
D_MODEL = 32     # embedding dim
NHEAD = 4        # attention heads
DIM_FF = 64      # feedforward hidden dim
HEAD_DIM = D_MODEL // NHEAD
LN_EPS = 1e-5

SB = SEQ * BATCH                       # total tokens processed in one kernel step
VEC_W = max(3 * D_MODEL, DIM_FF)       # row width of the packed bias/LN block (=96)
NEG_INF = -1e30


def _layer_norm(v, gamma, beta):
    mu = jnp.mean(v, axis=-1, keepdims=True)
    var = jnp.mean((v - mu) ** 2, axis=-1, keepdims=True)
    return (v - mu) * lax.rsqrt(var + LN_EPS) * gamma + beta


# ---------------------------------------------------------------------------
# Pallas kernel: the full encoder layer (all batches / tokens) in one step
# ---------------------------------------------------------------------------
def encoder_layer_kernel(x_ref, pos_ref, wqkv_ref, wo_ref, w1_ref, w2_ref,
                         vec_ref, mask_ref, o_ref):
    D, F = D_MODEL, DIM_FF

    x = x_ref[...]                      # [SB, D]   token row r = s*BATCH + b
    pos = pos_ref[...]                  # [SB, D]
    vec = vec_ref[...]                  # [8, VEC_W] packed biases / LN params
    mask = mask_ref[...]                # [SB, SB]  additive 0 / -1e30 same-batch mask

    bqkv = vec[0:1, :3 * D]             # [1, 3D] (q-third already pre-scaled)
    bo = vec[1:2, :D]
    b1 = vec[2:3, :F]
    b2 = vec[3:4, :D]
    g1 = vec[4:5, :D]
    be1 = vec[5:6, :D]
    g2 = vec[6:7, :D]
    be2 = vec[7:8, :D]

    # --- fused Q/K/V projection: one K=2D MXU pass on [x | pos] ---
    xcat = jnp.concatenate([x, pos], axis=-1)                        # [SB, 2D]
    qkv = jnp.dot(xcat, wqkv_ref[...],
                  preferred_element_type=jnp.float32) + bqkv         # [SB, 3D]

    q = qkv[:, 0 * D:1 * D]             # 1/sqrt(head_dim) folded into weights/bias
    k = qkv[:, 1 * D:2 * D]
    v = qkv[:, 2 * D:3 * D]

    # --- attention: unrolled static loop over heads, flat 2-D dots only ---
    ctx_heads = []
    for h in range(NHEAD):              # static Python loop (NHEAD=4), fully unrolled
        lo = h * HEAD_DIM
        hi = lo + HEAD_DIM
        q_h = q[:, lo:hi]               # [SB, Dh] lane slices, no rank-3 reshape
        k_h = k[:, lo:hi]
        v_h = v[:, lo:hi]
        s_h = lax.dot_general(q_h, k_h, (((1,), (1,)), ((), ())),
                              preferred_element_type=jnp.float32)    # [SB, SB]
        s_h = s_h + mask                                             # additive mask
        s_h = s_h - jnp.max(s_h, axis=-1, keepdims=True)
        p_h = jnp.exp(s_h)
        denom = jnp.sum(p_h, axis=-1, keepdims=True)                 # [SB, 1]
        ctx_h = jnp.dot(p_h, v_h, preferred_element_type=jnp.float32)
        # deferred softmax normalization: scale the small ctx, not the big p
        ctx_heads.append(ctx_h * pl.reciprocal(denom, approx=False))
    ctx = jnp.concatenate(ctx_heads, axis=-1)                        # [SB, D]

    attn_out = jnp.dot(ctx, wo_ref[...], preferred_element_type=jnp.float32) + bo

    # --- residual + norm1 (dropout1 identity in eval) ---
    src1 = _layer_norm(x + attn_out, g1, be1)

    # --- feedforward: linear2(relu(linear1(src))) (dropout identity in eval) ---
    hdn = jnp.dot(src1, w1_ref[...], preferred_element_type=jnp.float32) + b1
    hdn = jnp.maximum(hdn, 0.0)
    ff = jnp.dot(hdn, w2_ref[...], preferred_element_type=jnp.float32) + b2

    # --- residual + norm2 (dropout2 identity in eval) ---
    out = _layer_norm(src1 + ff, g2, be2)

    o_ref[...] = out.astype(o_ref.dtype)                             # [SB, D] store


# ---------------------------------------------------------------------------
# One-time parameter packing (do this once, outside the hot path)
# ---------------------------------------------------------------------------
def pack_params(params):
    D = D_MODEL
    scale = 1.0 / math.sqrt(HEAD_DIM)
    in_w = params['in_proj_weight']          # [3D, D]
    in_b = params['in_proj_bias']            # [3D]

    wq_t = in_w[0:D].T * scale               # fold attention scale into Q columns
    wk_t = in_w[D:2 * D].T
    wv_t = in_w[2 * D:3 * D].T

    # [2D, 3D]: top block multiplies x, bottom block multiplies pos (V sees only x).
    top = jnp.concatenate([wq_t, wk_t, wv_t], axis=1)
    bot = jnp.concatenate([wq_t, wk_t, jnp.zeros_like(wv_t)], axis=1)
    wqkv_t = jnp.concatenate([top, bot], axis=0)

    bqkv = jnp.concatenate([in_b[0:D] * scale, in_b[D:2 * D], in_b[2 * D:3 * D]])

    def row(vv):
        return jnp.pad(vv, (0, VEC_W - vv.shape[0]))

    vecs = jnp.stack([
        row(bqkv),                                                   # bqkv (3D)
        row(params['out_proj_bias']),                                # bo
        row(params['linear1_bias']),                                 # b1
        row(params['linear2_bias']),                                 # b2
        row(params['norm1_weight']),                                 # gamma1
        row(params['norm1_bias']),                                   # beta1
        row(params['norm2_weight']),                                 # gamma2
        row(params['norm2_bias']),                                   # beta2
    ], axis=0).astype(jnp.float32)                                   # [8, VEC_W]

    # Additive same-batch mask (token row r = s*BATCH + b -> batch r % BATCH).
    r_b = jnp.arange(SB, dtype=jnp.int32)[:, None] % BATCH
    t_b = jnp.arange(SB, dtype=jnp.int32)[None, :] % BATCH
    mask = jnp.where(r_b == t_b, 0.0, NEG_INF).astype(jnp.float32)   # [SB, SB]

    return {
        'wqkv_t': wqkv_t.astype(jnp.float32),
        'wo_t': params['out_proj_weight'].T.astype(jnp.float32),
        'w1_t': params['linear1_weight'].T.astype(jnp.float32),
        'w2_t': params['linear2_weight'].T.astype(jnp.float32),
        'vecs': vecs,
        'mask': mask,
    }


# ---------------------------------------------------------------------------
# Wrapper: free reshapes only (no transposes), single pallas_call, no grid
# ---------------------------------------------------------------------------
def transformer_encoder_layer(src_sbd, pos_sbd, packed):
    """src_sbd, pos_sbd: [S, B, D] (PyTorch MHA layout). Returns [S, B, D]."""
    S, B, D = src_sbd.shape
    x2 = src_sbd.reshape(S * B, D)      # contiguous flatten: row r = s*B + b
    p2 = pos_sbd.reshape(S * B, D)

    vmem = lambda: pl.BlockSpec(memory_space=pltpu.MemorySpace.VMEM)
    out = pl.pallas_call(
        encoder_layer_kernel,
        out_shape=jax.ShapeDtypeStruct((S * B, D), jnp.float32),
        in_specs=[vmem() for _ in range(8)],
        out_specs=vmem(),
    )(x2, p2, packed['wqkv_t'], packed['wo_t'], packed['w1_t'],
      packed['w2_t'], packed['vecs'], packed['mask'])

    return out.reshape(S, B, D)         # free inverse of the flatten above


# ---------------------------------------------------------------------------
# Pure-JAX reference (same math, unpacked params) for a sanity check
# ---------------------------------------------------------------------------
def reference_forward(src_sbd, pos_sbd, params):
    x = jnp.transpose(src_sbd, (1, 0, 2))
    pos = jnp.transpose(pos_sbd, (1, 0, 2))
    D = D_MODEL
    in_w, in_b = params['in_proj_weight'], params['in_proj_bias']
    qk = x + pos
    q = qk @ in_w[:D].T + in_b[:D]
    k = qk @ in_w[D:2 * D].T + in_b[D:2 * D]
    v = x @ in_w[2 * D:].T + in_b[2 * D:]

    def split(t):  # [B,S,D] -> [B,H,S,Dh]
        return jnp.transpose(t.reshape(BATCH, SEQ, NHEAD, HEAD_DIM), (0, 2, 1, 3))

    qh, kh, vh = split(q) / math.sqrt(HEAD_DIM), split(k), split(v)
    attn = jax.nn.softmax(jnp.einsum('bhsd,bhtd->bhst', qh, kh), axis=-1)
    ctx = jnp.einsum('bhst,bhtd->bhsd', attn, vh)
    ctx = jnp.transpose(ctx, (0, 2, 1, 3)).reshape(BATCH, SEQ, D)
    attn_out = ctx @ params['out_proj_weight'].T + params['out_proj_bias']

    src = _layer_norm(x + attn_out, params['norm1_weight'], params['norm1_bias'])
    h = jax.nn.relu(src @ params['linear1_weight'].T + params['linear1_bias'])
    ff = h @ params['linear2_weight'].T + params['linear2_bias']
    src = _layer_norm(src + ff, params['norm2_weight'], params['norm2_bias'])
    return jnp.transpose(src, (1, 0, 2))


# ---------------------------------------------------------------------------
if __name__ == "__main__":
    key = jax.random.PRNGKey(0)
    ks = jax.random.split(key, 10)

    src = jax.random.normal(ks[0], (SEQ, BATCH, D_MODEL), dtype=jnp.float32)
    pos = jax.random.normal(ks[1], (SEQ, BATCH, D_MODEL), dtype=jnp.float32) * 0.1

    def init(k, shape, scale):
        return jax.random.normal(k, shape, dtype=jnp.float32) * scale

    params = {
        'in_proj_weight':  init(ks[2], (3 * D_MODEL, D_MODEL), 1.0 / math.sqrt(D_MODEL)),
        'in_proj_bias':    jnp.zeros((3 * D_MODEL,), jnp.float32),
        'out_proj_weight': init(ks[3], (D_MODEL, D_MODEL), 1.0 / math.sqrt(D_MODEL)),
        'out_proj_bias':   jnp.zeros((D_MODEL,), jnp.float32),
        'linear1_weight':  init(ks[4], (DIM_FF, D_MODEL), 1.0 / math.sqrt(D_MODEL)),
        'linear1_bias':    init(ks[5], (DIM_FF,), 0.02),
        'linear2_weight':  init(ks[6], (D_MODEL, DIM_FF), 1.0 / math.sqrt(DIM_FF)),
        'linear2_bias':    init(ks[7], (D_MODEL,), 0.02),
        'norm1_weight':    jnp.ones((D_MODEL,), jnp.float32),
        'norm1_bias':      jnp.zeros((D_MODEL,), jnp.float32),
        'norm2_weight':    jnp.ones((D_MODEL,), jnp.float32),
        'norm2_bias':      jnp.zeros((D_MODEL,), jnp.float32),
    }

    packed = pack_params(params)                       # one-time weight packing
    fwd = jax.jit(transformer_encoder_layer)

    out = jax.block_until_ready(fwd(src, pos, packed))

    ref = reference_forward(src, pos, params)
    assert out.shape == (SEQ, BATCH, D_MODEL)
    assert jnp.allclose(out, ref, atol=1e-4, rtol=1e-4), "mismatch vs reference"

    print("KERNEL_OK")
</pallas_src>

<mosaic_0001>
module attributes {stable_mosaic.version = 11 : i64} {
  func.func @encoder_layer_kernel(%arg0: memref<16x32xf32, #tpu.memory_space<vmem>>, %arg1: memref<16x32xf32, #tpu.memory_space<vmem>>, %arg2: memref<64x96xf32, #tpu.memory_space<vmem>>, %arg3: memref<32x32xf32, #tpu.memory_space<vmem>>, %arg4: memref<32x64xf32, #tpu.memory_space<vmem>>, %arg5: memref<64x32xf32, #tpu.memory_space<vmem>>, %arg6: memref<8x96xf32, #tpu.memory_space<vmem>>, %arg7: memref<16x16xf32, #tpu.memory_space<vmem>>, %arg8: memref<16x32xf32, #tpu.memory_space<vmem>>) attributes {dimension_semantics = [], scalar_prefetch = 0 : i64, scratch_operands = 0 : i64, tpu.core_type = #tpu.core_type<tc>} {
    %c0 = arith.constant 0 : index
    %c0_0 = arith.constant 0 : index
    %0 = vector.load %arg0[%c0, %c0_0] : memref<16x32xf32, #tpu.memory_space<vmem>>, vector<16x32xf32>
    %c0_1 = arith.constant 0 : index
    %c0_2 = arith.constant 0 : index
    %1 = vector.load %arg1[%c0_1, %c0_2] : memref<16x32xf32, #tpu.memory_space<vmem>>, vector<16x32xf32>
    %c0_3 = arith.constant 0 : index
    %c0_4 = arith.constant 0 : index
    %2 = vector.load %arg6[%c0_3, %c0_4] : memref<8x96xf32, #tpu.memory_space<vmem>>, vector<8x96xf32>
    %c0_5 = arith.constant 0 : index
    %c0_6 = arith.constant 0 : index
    %3 = vector.load %arg7[%c0_5, %c0_6] : memref<16x16xf32, #tpu.memory_space<vmem>>, vector<16x16xf32>
    %4 = vector.extract_strided_slice %2 {offsets = [0, 0], sizes = [1, 96], strides = [1, 1]} : vector<8x96xf32> to vector<1x96xf32>
    %5 = vector.extract_strided_slice %2 {offsets = [1, 0], sizes = [1, 32], strides = [1, 1]} : vector<8x96xf32> to vector<1x32xf32>
    %6 = vector.extract_strided_slice %2 {offsets = [2, 0], sizes = [1, 64], strides = [1, 1]} : vector<8x96xf32> to vector<1x64xf32>
    %7 = vector.extract_strided_slice %2 {offsets = [3, 0], sizes = [1, 32], strides = [1, 1]} : vector<8x96xf32> to vector<1x32xf32>
    %8 = vector.extract_strided_slice %2 {offsets = [4, 0], sizes = [1, 32], strides = [1, 1]} : vector<8x96xf32> to vector<1x32xf32>
    %9 = vector.extract_strided_slice %2 {offsets = [5, 0], sizes = [1, 32], strides = [1, 1]} : vector<8x96xf32> to vector<1x32xf32>
    %10 = vector.extract_strided_slice %2 {offsets = [6, 0], sizes = [1, 32], strides = [1, 1]} : vector<8x96xf32> to vector<1x32xf32>
    %11 = vector.extract_strided_slice %2 {offsets = [7, 0], sizes = [1, 32], strides = [1, 1]} : vector<8x96xf32> to vector<1x32xf32>
    %12 = tpu.concatenate %0, %1 in 1 : vector<16x32xf32>, vector<16x32xf32> -> vector<16x64xf32>
    %c0_7 = arith.constant 0 : index
    %c0_8 = arith.constant 0 : index
    %13 = vector.load %arg2[%c0_7, %c0_8] : memref<64x96xf32, #tpu.memory_space<vmem>>, vector<64x96xf32>
    %cst = arith.constant dense<0.000000e+00> : vector<16x96xf32>
    %14 = tpu.matmul %12, %13, %cst {dimension_numbers = #tpu.dot_dimension_numbers<[1], [0], [0], [1], [0, 0, 1, 1], [], []>} : vector<16x64xf32>, vector<64x96xf32>, vector<16x96xf32> -> vector<16x96xf32>
    %15 = vector.broadcast %4 : vector<1x96xf32> to vector<16x96xf32>
    %16 = arith.addf %14, %15 : vector<16x96xf32>
    %17 = vector.extract_strided_slice %16 {offsets = [0, 0], sizes = [16, 32], strides = [1, 1]} : vector<16x96xf32> to vector<16x32xf32>
    %18 = vector.extract_strided_slice %16 {offsets = [0, 32], sizes = [16, 32], strides = [1, 1]} : vector<16x96xf32> to vector<16x32xf32>
    %19 = vector.extract_strided_slice %16 {offsets = [0, 64], sizes = [16, 32], strides = [1, 1]} : vector<16x96xf32> to vector<16x32xf32>
    %20 = vector.extract_strided_slice %17 {offsets = [0, 0], sizes = [16, 8], strides = [1, 1]} : vector<16x32xf32> to vector<16x8xf32>
    %21 = vector.extract_strided_slice %18 {offsets = [0, 0], sizes = [16, 8], strides = [1, 1]} : vector<16x32xf32> to vector<16x8xf32>
    %22 = vector.extract_strided_slice %19 {offsets = [0, 0], sizes = [16, 8], strides = [1, 1]} : vector<16x32xf32> to vector<16x8xf32>
    %cst_9 = arith.constant dense<0.000000e+00> : vector<16x16xf32>
    %23 = tpu.matmul %20, %21, %cst_9 {dimension_numbers = #tpu.dot_dimension_numbers<[1], [1], [0], [0], [0, 0, 1, 0], [], []>} : vector<16x8xf32>, vector<16x8xf32>, vector<16x16xf32> -> vector<16x16xf32>
    %24 = arith.addf %23, %3 : vector<16x16xf32>
    %cst_10 = arith.constant dense<0xFF800000> : vector<16xf32>
    %25 = vector.multi_reduction <maximumf>, %24, %cst_10 [1] : vector<16x16xf32> to vector<16xf32>
    %26 = vector.shape_cast %25 : vector<16xf32> to vector<16x1xf32>
    %27 = vector.broadcast %26 : vector<16x1xf32> to vector<16x16xf32>
    %28 = arith.subf %24, %27 : vector<16x16xf32>
    %29 = math.exp %28 : vector<16x16xf32>
    %cst_11 = arith.constant dense<0.000000e+00> : vector<16xf32>
    %30 = vector.multi_reduction <add>, %29, %cst_11 [1] : vector<16x16xf32> to vector<16xf32>
    %31 = vector.shape_cast %30 : vector<16xf32> to vector<16x1xf32>
    %cst_12 = arith.constant dense<0.000000e+00> : vector<16x8xf32>
    %32 = tpu.matmul %29, %22, %cst_12 {dimension_numbers = #tpu.dot_dimension_numbers<[1], [0], [0], [1], [0, 0, 1, 1], [], []>} : vector<16x16xf32>, vector<16x8xf32>, vector<16x8xf32> -> vector<16x8xf32>
    %33 = tpu.reciprocal %31 : vector<16x1xf32> -> vector<16x1xf32>
    %34 = vector.broadcast %33 : vector<16x1xf32> to vector<16x8xf32>
    %35 = arith.mulf %32, %34 : vector<16x8xf32>
    %36 = vector.extract_strided_slice %17 {offsets = [0, 8], sizes = [16, 8], strides = [1, 1]} : vector<16x32xf32> to vector<16x8xf32>
    %37 = vector.extract_strided_slice %18 {offsets = [0, 8], sizes = [16, 8], strides = [1, 1]} : vector<16x32xf32> to vector<16x8xf32>
    %38 = vector.extract_strided_slice %19 {offsets = [0, 8], sizes = [16, 8], strides = [1, 1]} : vector<16x32xf32> to vector<16x8xf32>
    %cst_13 = arith.constant dense<0.000000e+00> : vector<16x16xf32>
    %39 = tpu.matmul %36, %37, %cst_13 {dimension_numbers = #tpu.dot_dimension_numbers<[1], [1], [0], [0], [0, 0, 1, 0], [], []>} : vector<16x8xf32>, vector<16x8xf32>, vector<16x16xf32> -> vector<16x16xf32>
    %40 = arith.addf %39, %3 : vector<16x16xf32>
    %cst_14 = arith.constant dense<0xFF800000> : vector<16xf32>
    %41 = vector.multi_reduction <maximumf>, %40, %cst_14 [1] : vector<16x16xf32> to vector<16xf32>
    %42 = vector.shape_cast %41 : vector<16xf32> to vector<16x1xf32>
    %43 = vector.broadcast %42 : vector<16x1xf32> to vector<16x16xf32>
    %44 = arith.subf %40, %43 : vector<16x16xf32>
    %45 = math.exp %44 : vector<16x16xf32>
    %cst_15 = arith.constant dense<0.000000e+00> : vector<16xf32>
    %46 = vector.multi_reduction <add>, %45, %cst_15 [1] : vector<16x16xf32> to vector<16xf32>
    %47 = vector.shape_cast %46 : vector<16xf32> to vector<16x1xf32>
    %cst_16 = arith.constant dense<0.000000e+00> : vector<16x8xf32>
    %48 = tpu.matmul %45, %38, %cst_16 {dimension_numbers = #tpu.dot_dimension_numbers<[1], [0], [0], [1], [0, 0, 1, 1], [], []>} : vector<16x16xf32>, vector<16x8xf32>, vector<16x8xf32> -> vector<16x8xf32>
    %49 = tpu.reciprocal %47 : vector<16x1xf32> -> vector<16x1xf32>
    %50 = vector.broadcast %49 : vector<16x1xf32> to vector<16x8xf32>
    %51 = arith.mulf %48, %50 : vector<16x8xf32>
    %52 = vector.extract_strided_slice %17 {offsets = [0, 16], sizes = [16, 8], strides = [1, 1]} : vector<16x32xf32> to vector<16x8xf32>
    %53 = vector.extract_strided_slice %18 {offsets = [0, 16], sizes = [16, 8], strides = [1, 1]} : vector<16x32xf32> to vector<16x8xf32>
    %54 = vector.extract_strided_slice %19 {offsets = [0, 16], sizes = [16, 8], strides = [1, 1]} : vector<16x32xf32> to vector<16x8xf32>
    %cst_17 = arith.constant dense<0.000000e+00> : vector<16x16xf32>
    %55 = tpu.matmul %52, %53, %cst_17 {dimension_numbers = #tpu.dot_dimension_numbers<[1], [1], [0], [0], [0, 0, 1, 0], [], []>} : vector<16x8xf32>, vector<16x8xf32>, vector<16x16xf32> -> vector<16x16xf32>
    %56 = arith.addf %55, %3 : vector<16x16xf32>
    %cst_18 = arith.constant dense<0xFF800000> : vector<16xf32>
    %57 = vector.multi_reduction <maximumf>, %56, %cst_18 [1] : vector<16x16xf32> to vector<16xf32>
    %58 = vector.shape_cast %57 : vector<16xf32> to vector<16x1xf32>
    %59 = vector.broadcast %58 : vector<16x1xf32> to vector<16x16xf32>
    %60 = arith.subf %56, %59 : vector<16x16xf32>
    %61 = math.exp %60 : vector<16x16xf32>
    %cst_19 = arith.constant dense<0.000000e+00> : vector<16xf32>
    %62 = vector.multi_reduction <add>, %61, %cst_19 [1] : vector<16x16xf32> to vector<16xf32>
    %63 = vector.shape_cast %62 : vector<16xf32> to vector<16x1xf32>
    %cst_20 = arith.constant dense<0.000000e+00> : vector<16x8xf32>
    %64 = tpu.matmul %61, %54, %cst_20 {dimension_numbers = #tpu.dot_dimension_numbers<[1], [0], [0], [1], [0, 0, 1, 1], [], []>} : vector<16x16xf32>, vector<16x8xf32>, vector<16x8xf32> -> vector<16x8xf32>
    %65 = tpu.reciprocal %63 : vector<16x1xf32> -> vector<16x1xf32>
    %66 = vector.broadcast %65 : vector<16x1xf32> to vector<16x8xf32>
    %67 = arith.mulf %64, %66 : vector<16x8xf32>
    %68 = vector.extract_strided_slice %17 {offsets = [0, 24], sizes = [16, 8], strides = [1, 1]} : vector<16x32xf32> to vector<16x8xf32>
    %69 = vector.extract_strided_slice %18 {offsets = [0, 24], sizes = [16, 8], strides = [1, 1]} : vector<16x32xf32> to vector<16x8xf32>
    %70 = vector.extract_strided_slice %19 {offsets = [0, 24], sizes = [16, 8], strides = [1, 1]} : vector<16x32xf32> to vector<16x8xf32>
    %cst_21 = arith.constant dense<0.000000e+00> : vector<16x16xf32>
    %71 = tpu.matmul %68, %69, %cst_21 {dimension_numbers = #tpu.dot_dimension_numbers<[1], [1], [0], [0], [0, 0, 1, 0], [], []>} : vector<16x8xf32>, vector<16x8xf32>, vector<16x16xf32> -> vector<16x16xf32>
    %72 = arith.addf %71, %3 : vector<16x16xf32>
    %cst_22 = arith.constant dense<0xFF800000> : vector<16xf32>
    %73 = vector.multi_reduction <maximumf>, %72, %cst_22 [1] : vector<16x16xf32> to vector<16xf32>
    %74 = vector.shape_cast %73 : vector<16xf32> to vector<16x1xf32>
    %75 = vector.broadcast %74 : vector<16x1xf32> to vector<16x16xf32>
    %76 = arith.subf %72, %75 : vector<16x16xf32>
    %77 = math.exp %76 : vector<16x16xf32>
    %cst_23 = arith.constant dense<0.000000e+00> : vector<16xf32>
    %78 = vector.multi_reduction <add>, %77, %cst_23 [1] : vector<16x16xf32> to vector<16xf32>
    %79 = vector.shape_cast %78 : vector<16xf32> to vector<16x1xf32>
    %cst_24 = arith.constant dense<0.000000e+00> : vector<16x8xf32>
    %80 = tpu.matmul %77, %70, %cst_24 {dimension_numbers = #tpu.dot_dimension_numbers<[1], [0], [0], [1], [0, 0, 1, 1], [], []>} : vector<16x16xf32>, vector<16x8xf32>, vector<16x8xf32> -> vector<16x8xf32>
    %81 = tpu.reciprocal %79 : vector<16x1xf32> -> vector<16x1xf32>
    %82 = vector.broadcast %81 : vector<16x1xf32> to vector<16x8xf32>
    %83 = arith.mulf %80, %82 : vector<16x8xf32>
    %84 = tpu.concatenate %35, %51, %67, %83 in 1 : vector<16x8xf32>, vector<16x8xf32>, vector<16x8xf32>, vector<16x8xf32> -> vector<16x32xf32>
    %c0_25 = arith.constant 0 : index
    %c0_26 = arith.constant 0 : index
    %85 = vector.load %arg3[%c0_25, %c0_26] : memref<32x32xf32, #tpu.memory_space<vmem>>, vector<32x32xf32>
    %cst_27 = arith.constant dense<0.000000e+00> : vector<16x32xf32>
    %86 = tpu.matmul %84, %85, %cst_27 {dimension_numbers = #tpu.dot_dimension_numbers<[1], [0], [0], [1], [0, 0, 1, 1], [], []>} : vector<16x32xf32>, vector<32x32xf32>, vector<16x32xf32> -> vector<16x32xf32>
    %87 = vector.broadcast %5 : vector<1x32xf32> to vector<16x32xf32>
    %88 = arith.addf %86, %87 : vector<16x32xf32>
    %89 = arith.addf %0, %88 : vector<16x32xf32>
    %cst_28 = arith.constant dense<0.000000e+00> : vector<16xf32>
    %90 = vector.multi_reduction <add>, %89, %cst_28 [1] : vector<16x32xf32> to vector<16xf32>
    %91 = vector.shape_cast %90 : vector<16xf32> to vector<16x1xf32>
    %cst_29 = arith.constant 3.200000e+01 : f32
    %92 = vector.broadcast %cst_29 : f32 to vector<16x1xf32>
    %93 = arith.divf %91, %92 : vector<16x1xf32>
    %94 = vector.broadcast %93 : vector<16x1xf32> to vector<16x32xf32>
    %95 = arith.subf %89, %94 : vector<16x32xf32>
    %96 = arith.mulf %95, %95 : vector<16x32xf32>
    %cst_30 = arith.constant dense<0.000000e+00> : vector<16xf32>
    %97 = vector.multi_reduction <add>, %96, %cst_30 [1] : vector<16x32xf32> to vector<16xf32>
    %98 = vector.shape_cast %97 : vector<16xf32> to vector<16x1xf32>
    %cst_31 = arith.constant 3.200000e+01 : f32
    %99 = vector.broadcast %cst_31 : f32 to vector<16x1xf32>
    %100 = arith.divf %98, %99 : vector<16x1xf32>
    %101 = vector.broadcast %93 : vector<16x1xf32> to vector<16x32xf32>
    %102 = arith.subf %89, %101 : vector<16x32xf32>
    %cst_32 = arith.constant 9.99999974E-6 : f32
    %103 = vector.broadcast %cst_32 : f32 to vector<16x1xf32>
    %104 = arith.addf %100, %103 : vector<16x1xf32>
    %105 = math.rsqrt %104 : vector<16x1xf32>
    %106 = vector.broadcast %105 : vector<16x1xf32> to vector<16x32xf32>
    %107 = arith.mulf %102, %106 : vector<16x32xf32>
    %108 = vector.broadcast %8 : vector<1x32xf32> to vector<16x32xf32>
    %109 = arith.mulf %107, %108 : vector<16x32xf32>
    %110 = vector.broadcast %9 : vector<1x32xf32> to vector<16x32xf32>
    %111 = arith.addf %109, %110 : vector<16x32xf32>
    %c0_33 = arith.constant 0 : index
    %c0_34 = arith.constant 0 : index
    %112 = vector.load %arg4[%c0_33, %c0_34] : memref<32x64xf32, #tpu.memory_space<vmem>>, vector<32x64xf32>
    %cst_35 = arith.constant dense<0.000000e+00> : vector<16x64xf32>
    %113 = tpu.matmul %111, %112, %cst_35 {dimension_numbers = #tpu.dot_dimension_numbers<[1], [0], [0], [1], [0, 0, 1, 1], [], []>} : vector<16x32xf32>, vector<32x64xf32>, vector<16x64xf32> -> vector<16x64xf32>
    %114 = vector.broadcast %6 : vector<1x64xf32> to vector<16x64xf32>
    %115 = arith.addf %113, %114 : vector<16x64xf32>
    %cst_36 = arith.constant 0.000000e+00 : f32
    %116 = vector.broadcast %cst_36 : f32 to vector<16x64xf32>
    %117 = arith.maximumf %115, %116 : vector<16x64xf32>
    %c0_37 = arith.constant 0 : index
    %c0_38 = arith.constant 0 : index
    %118 = vector.load %arg5[%c0_37, %c0_38] : memref<64x32xf32, #tpu.memory_space<vmem>>, vector<64x32xf32>
    %cst_39 = arith.constant dense<0.000000e+00> : vector<16x32xf32>
    %119 = tpu.matmul %117, %118, %cst_39 {dimension_numbers = #tpu.dot_dimension_numbers<[1], [0], [0], [1], [0, 0, 1, 1], [], []>} : vector<16x64xf32>, vector<64x32xf32>, vector<16x32xf32> -> vector<16x32xf32>
    %120 = vector.broadcast %7 : vector<1x32xf32> to vector<16x32xf32>
    %121 = arith.addf %119, %120 : vector<16x32xf32>
    %122 = arith.addf %111, %121 : vector<16x32xf32>
    %cst_40 = arith.constant dense<0.000000e+00> : vector<16xf32>
    %123 = vector.multi_reduction <add>, %122, %cst_40 [1] : vector<16x32xf32> to vector<16xf32>
    %124 = vector.shape_cast %123 : vector<16xf32> to vector<16x1xf32>
    %cst_41 = arith.constant 3.200000e+01 : f32
    %125 = vector.broadcast %cst_41 : f32 to vector<16x1xf32>
    %126 = arith.divf %124, %125 : vector<16x1xf32>
    %127 = vector.broadcast %126 : vector<16x1xf32> to vector<16x32xf32>
    %128 = arith.subf %122, %127 : vector<16x32xf32>
    %129 = arith.mulf %128, %128 : vector<16x32xf32>
    %cst_42 = arith.constant dense<0.000000e+00> : vector<16xf32>
    %130 = vector.multi_reduction <add>, %129, %cst_42 [1] : vector<16x32xf32> to vector<16xf32>
    %131 = vector.shape_cast %130 : vector<16xf32> to vector<16x1xf32>
    %cst_43 = arith.constant 3.200000e+01 : f32
    %132 = vector.broadcast %cst_43 : f32 to vector<16x1xf32>
    %133 = arith.divf %131, %132 : vector<16x1xf32>
    %134 = vector.broadcast %126 : vector<16x1xf32> to vector<16x32xf32>
    %135 = arith.subf %122, %134 : vector<16x32xf32>
    %cst_44 = arith.constant 9.99999974E-6 : f32
    %136 = vector.broadcast %cst_44 : f32 to vector<16x1xf32>
    %137 = arith.addf %133, %136 : vector<16x1xf32>
    %138 = math.rsqrt %137 : vector<16x1xf32>
    %139 = vector.broadcast %138 : vector<16x1xf32> to vector<16x32xf32>
    %140 = arith.mulf %135, %139 : vector<16x32xf32>
    %141 = vector.broadcast %10 : vector<1x32xf32> to vector<16x32xf32>
    %142 = arith.mulf %140, %141 : vector<16x32xf32>
    %143 = vector.broadcast %11 : vector<1x32xf32> to vector<16x32xf32>
    %144 = arith.addf %142, %143 : vector<16x32xf32>
    %c0_45 = arith.constant 0 : index
    %c0_46 = arith.constant 0 : index
    %145 = vector.load %arg8[%c0_45, %c0_46] : memref<16x32xf32, #tpu.memory_space<vmem>>, vector<16x32xf32>
    tpu.vector_store %arg8[%c0_45, %c0_46], %144 {strides = array<i32>} : memref<16x32xf32, #tpu.memory_space<vmem>>, vector<16x32xf32>,
    return
  }
}

</mosaic_0001>

<bundles_post_ra>
// kernel: transformer_encoder_layer.1
= control target key start
LH: loop header
LB: loop body
LE: loop exit
PB: predicated region body
PF: predicated region fallthrough
CT: control target
= control target key end

     0   :  { %13 = vsyncpa [#allocation3], 0  ;;  %s2244_s0 = inlined_call_operand.vmem [shape: f32[16,32], index: 0, kind: input, shape index: {}]   ;;  %s2245_s1 = inlined_call_operand.hbm [shape: f32[16,32], index: 1, kind: input, shape index: {}]   ;;  %s2246_s2 = inlined_call_operand.vmem [shape: f32[64,96], index: 2, kind: input, shape index: {}]   ;;  %s2247_s3 = inlined_call_operand.vmem [shape: f32[32,32], index: 3, kind: input, shape index: {}]   ;;  %s2248_s4 = inlined_call_operand.hbm [shape: f32[32,64], index: 4, kind: input, shape index: {}]   ;;  %s2249_s5 = inlined_call_operand.vmem [shape: f32[64,32], index: 5, kind: input, shape index: {}]   ;;  %s2250_s6 = inlined_call_operand.vmem [shape: f32[8,96], index: 6, kind: input, shape index: {}]   ;;  %s2251_s7 = inlined_call_operand.hbm [shape: f32[16,16], index: 7, kind: input, shape index: {}]   ;;  %s2252_s8 = inlined_call_operand.hbm [shape: f32[16,32], index: 8, kind: output, shape index: {}]  }
   0x1   :  { %14 = vsyncpa [#allocation6], 0 }
   0x2   :  { %15 = vsyncpa [#allocation4], 0  ;;  %s1882_s27 = smov [#allocation5]   ;;  %s1883_s29 = smov [#allocation2]  }
   0x3   :  { %s39_s28 = sshll.u32 %s1882_s27, 4  ;;  %s23_s30 = sshll.u32 %s1883_s29, 4  ;;  %s40_s28 = int_to_ptr.vmem [resolvable:$true] %s39_s28  ;;  %s1947_s30 = int_to_ptr.vmem [resolvable:$true] %s23_s30 }
   0x4   :  { %s1788_s11 = scalar_lea.hbm %s2248_s4, 512 }
   0x5   :  { %p1789_p0 = scmp.ne.s32.totalorder %s2248_s4, %s1788_s11  ;;  %p1792_p1 = scmp.lt.u32.totalorder %s1788_s11, %s2248_s4 }
   0x7   :  { %p1794_p2 = pnand %p1792_p1, %p1789_p0 }
   0x9   :  { %1797 = shalt.err (!%p1794_p2)
}
   0xa   :  { %s1798_s16 = scalar_lea.vmem %s40_s28, 512  ;;  %p1803_p4 = scmp.lt.s32.totalorder %s40_s28, %s40_s28 }
   0xb   :  { %p1799_p3 = scmp.ne.s32.totalorder %s40_s28, %s1798_s16  ;;  %p1804_p5 = scmp.lt.s32.totalorder %s1798_s16, %s1798_s16 }
   0xd   :  { %p1805_p6 = por %p1804_p5, %p1803_p4 }
   0xf   :  { %p1806_p7 = pnand %p1805_p6, %p1799_p3 }
  0x11   :  { %1809 = shalt.err (!%p1806_p7)
}
  0x12   :  { %s1884_s17 = smov 128   ;;  %s1885_s18 = smov 8  }
  0x13   :  { %45 = dma.hbm_to_vmem [thread:$0]  %s2248_s4, 512, %s40_s28, [#allocation6], %s1884_s17, %s1884_s17, %s1885_s18  }
  0x14   :  { %s1810_s23 = scalar_lea.hbm %s2245_s1, 256 }
  0x15   :  { %p1811_p8 = scmp.ne.s32.totalorder %s2245_s1, %s1810_s23  ;;  %p1814_p9 = scmp.lt.u32.totalorder %s1810_s23, %s2245_s1 }
  0x17   :  { %p1816_p10 = pnand %p1814_p9, %p1811_p8 }
  0x19   :  { %1819 = shalt.err (!%p1816_p10)
}
  0x1a   :  { %s1820_s29 = scalar_lea.vmem %s1947_s30, 256  ;;  %p1825_p12 = scmp.lt.s32.totalorder %s1947_s30, %s1947_s30 }
  0x1b   :  { %p1821_p11 = scmp.ne.s32.totalorder %s1947_s30, %s1820_s29  ;;  %p1826_p13 = scmp.lt.s32.totalorder %s1820_s29, %s1820_s29 }
  0x1d   :  { %p1827_p0 = por %p1826_p13, %p1825_p12 }
  0x1f   :  { %p1828_p1 = pnand %p1827_p0, %p1821_p11 }
  0x21   :  { %1831 = shalt.err (!%p1828_p1)
}
  0x22   :  { %29 = dma.hbm_to_vmem [thread:$0]  %s2245_s1, 256, %s1947_s30, [#allocation3], %s1884_s17, %s1884_s17, %s1885_s18  }
  0x23   :  { %s1886_s9 = smov [#allocation7]   ;;  %s1832_s13 = scalar_lea.hbm %s2251_s7, 256 }
  0x24   :  { %s55_s10 = sshll.u32 %s1886_s9, 4  ;;  %p1833_p2 = scmp.ne.s32.totalorder %s2251_s7, %s1832_s13  ;;  %s56_s10 = int_to_ptr.vmem [resolvable:$true] %s55_s10 }
  0x25   :  { %p1836_p3 = scmp.lt.u32.totalorder %s1832_s13, %s2251_s7 }
  0x27   :  { %p1838_p4 = pnand %p1836_p3, %p1833_p2 }
  0x29   :  { %1841 = shalt.err (!%p1838_p4)
}
  0x2a   :  { %s1842_s20 = scalar_lea.vmem %s56_s10, 256  ;;  %p1847_p6 = scmp.lt.s32.totalorder %s56_s10, %s56_s10 }
  0x2b   :  { %p1843_p5 = scmp.ne.s32.totalorder %s56_s10, %s1842_s20  ;;  %p1848_p7 = scmp.lt.s32.totalorder %s1842_s20, %s1842_s20 }
  0x2d   :  { %p1849_p8 = por %p1848_p7, %p1847_p6 }
  0x2f   :  { %p1850_p9 = pnand %p1849_p8, %p1843_p5 }
  0x31   :  { %1853 = shalt.err (!%p1850_p9)
}
  0x32   :  { %61 = dma.hbm_to_vmem [thread:$0]  %s2251_s7, 256, %s56_s10, [#allocation6], %s1884_s17, %s1884_s17, %s1885_s18  }
  0x33   :  { %1876 = dma.done.wait [#allocation3], 256  }
  0x34   :  { %1877 = vsyncadd [#allocation3], 4294967040 }
  0x35   :  { %1878 = dma.done.wait [#allocation6], 768  }
  0x36   :  { %1879 = vsyncadd [#allocation6], 4294966528  ;;  %v73_v0 = vld [vmem:[#allocation2] sm:$0xff]  ;;  %s1887_s23 = smov 32   ;;  %v90_v2 = vld [vmem:[%s2246_s2 + $0x8] sm:$0xff]  ;;  %vm86_vm0 = vcmask 261120   ;;  %v97_v20 = vlaneseq }
  0x37   :  { %v89_v1 = vld [vmem:[%s2246_s2] sm:$0xff]  ;;  %80 = vrot.lane.b32.xlu0 %v73_v0, %s1887_s23  ;;  %v91_v3 = vld [vmem:[%s2246_s2 + $0x10] sm:$0xff]  ;;  %v92_v4 = vld [vmem:[%s2246_s2 + $0x18] sm:$0xff]  ;;  %vm101_vm1 = vcmask 523264   ;;  %vm189_vm2 = vcmask 64512   ;;  %vm273_vm4 = vcmask 130048  }
  0x38   :  { %v74_v5 = vld [vmem:[#allocation2 + $0x8] sm:$0xff]  ;;  %v1600_v6 = vpack.c.bf16 %v90_v2, %v89_v1  ;;  %v1604_v7 = vpack.c.bf16 %v92_v4, %v91_v3  ;;  %v93_v8 = vld [vmem:[%s2246_s2 + $0x20] sm:$0xff]  ;;  %v95_v11 = vld [vmem:[%s2246_s2 + $0x30] sm:$0xff]  ;;  %v2039_v21 = vshrl.u32 %v97_v20, 7  ;;  %s1890_s30 = smov 80   ;;  %s1891_s21 = smov 64  }
  0x39   :  { %v94_v9 = vld [vmem:[%s2246_s2 + $0x28] sm:$0xff]  ;;  %v96_v12 = vld [vmem:[%s2246_s2 + $0x38] sm:$0xff]  ;;  %v2026_v14 = vld [vmem:[%s2244_s0] sm:$0xff]  ;;  %s1892_s22 = smov 120   ;;  %s1894_s24 = smov 72   ;;  %vm1011_vm5 = vcmask 195584  }
  0x3a   :  { %1601 = vmatprep.subr.bf16.mxu0 %v1600_v6  ;;  %v1608_v10 = vpack.c.bf16 %v94_v9, %v93_v8  ;;  %v1612_v13 = vpack.c.bf16 %v96_v12, %v95_v11  ;;  %v2034_v17 = vld [vmem:[%s2244_s0 + $0x8] sm:$0xff]  ;;  %v99_v22 = vsub.s32 0, %v2039_v21  ;;  %v2045_v23 = vld [vmem:[%s2250_s6] sm:$0xff]  ;;  %s1888_s0 = smov 96   ;;  %s1889_s6 = smov 88   ;;  %vm2062_vm3 = vmpackc.low %vm189_vm2, %vm189_vm2 }
  0x3b   :  { %82 = vrot.lane.b32.xlu0 %v74_v5, %s1887_s23  ;;  %1603 = vmatpush3.bf16.msra.mxu0 %v1600_v6  ;;  %v2072_v35 = vld [vmem:[#allocation7 + $0x8] sm:$0xff]  ;;  %v2074_v36 = vld [vmem:[#allocation7] sm:$0xff]  ;;  %s1893_s23 = smov 112   ;;  %s1895_s25 = smov 104  }
  0x3c   :  { %1605 = vmatprep.subr.bf16.mxu0 %v1604_v7  ;;  %v100_v24 = vrot.slane %v2045_v23, %v99_v22  ;;  %s1896_s26 = smov 48   ;;  %s1897_s27 = smov 56  }
  0x3d   :  { %s1898_s7 = smov 40   ;;  %s1899_s29 = smov 16  }
  0x3e   :  { %s1900_s15 = smov 24  }
  0x3f   :  { %1607 = vmatpush3.bf16.msra.mxu0 %v1604_v7 }
  0x40   :  { %1609 = vmatprep.subr.bf16.mxu0 %v1608_v10 }
  0x43   :  { %1611 = vmatpush3.bf16.msra.mxu0 %v1608_v10 }
  0x44   :  { %1613 = vmatprep.subr.bf16.mxu0 %v1612_v13 }
  0x47   :  { %1615 = vmatpush3.bf16.msra.mxu0 %v1612_v13 }
  0xa9   :  { %v81_v15 = vpop.permute.xlu0 %80 }
  0xaa   :  { %v87_v16 = vsel %vm86_vm0, %v2026_v14, %v81_v15 }
  0xab   :  { %1500 = vmatprep.mubr.msk.f32.mxu0 %vm101_vm1, %v87_v16 }
  0xad   :  { %v83_v18 = vpop.permute.xlu0 %82 }
  0xae   :  { %v88_v19 = vsel %vm86_vm0, %v2034_v17, %v83_v18 }
  0xaf   :  { %1501 = vmatmul.mubr.msk.f32.vlgmr.msra.gmra.mrb[0].mxu0 %vm101_vm1, %v88_v19 }
 0x182   :  { %v1502_v25 = vpop.f32.mrb[0].mxu0 }
 0x183   :  { %v2048_v26 = vadd.f32 %v1502_v25, %v100_v24  ;;  %v174_v27 = vpop.f32.mrb[1].mxu0 }
 0x184   :  { %v2050_v28 = vadd.f32 %v174_v27, %v100_v24 }
 0x186   :  { %1507 = vmatprep.mubr.msk.f32.mxu1 %vm189_vm2, %v2050_v28  ;;  %v2056_v29 = vpack.i.bf16 %v2048_v26, %v2050_v28 }
 0x188   :  { %1709 = vrot.lane.b32.xlu1 %v2056_v29, %s1888_s0 }
 0x18c   :  { %1719 = vrot.lane.b32.xlu1 %v2056_v29, %s1889_s6 }
 0x1fa   :  { %v1710_v30 = vpop.permute.xlu1 %1709 }
 0x1fb   :  { %v1712_v31 = vunpack.i.h.bf16 %v1710_v30  ;;  %v1711_v32 = vunpack.i.l.bf16 %v1710_v30 }
 0x1fd   :  { %v1616_v34 = vpack.c.bf16 %v1712_v31, %v1711_v32 }
 0x1fe   :  { %v1720_v43 = vpop.permute.xlu1 %1719 }
 0x1ff   :  { %1618 = vmatprep.subr.msk.bf16.mxu1 %vm2062_vm3, %v1616_v34  ;;  %v1722_v51 = vunpack.i.h.bf16 %v1720_v43  ;;  %v1721_v52 = vunpack.i.l.bf16 %v1720_v43 }
 0x200   :  { %1621 = vmatpush3.bf16.xpose.msk.msra.mxu1 %vm2062_vm3, %v1616_v34 }
 0x201   :  { %v1626_v56 = vpack.c.bf16 %v1722_v51, %v1721_v52 }
 0x207   :  { %1508 = vmatmul.mubr.msk.f32.vlgmr.msra.gmra.mrb[0].mxu1 %vm189_vm2, %v2048_v26 }
 0x2da   :  { %v1509_v37 = vpop.f32.mrb[0].mxu1 }
 0x2db   :  { %v270_v38 = vadd.f32 %v1509_v37, %v2072_v35  ;;  %v264_v39 = vpop.f32.mrb[1].mxu1 }
 0x2dc   :  { %v265_v40 = vadd.f32 %v264_v39, %v2074_v36 }
 0x2dd   :  { %v277_v41 = vsel %vm273_vm4, %v270_v38, -inf }
 0x2de   :  { %278 = vmax.xlane.f32.xlu0 %v277_v41  ;;  %v274_v42 = vsel %vm273_vm4, %v265_v40, -inf }
 0x2df   :  { %275 = vmax.xlane.f32.xlu1 %v274_v42 }
 0x2f0   :  { %1724 = vrot.lane.b32.xlu1 %v2056_v29, %s1890_s30 }
 0x2f4   :  { %1714 = vrot.lane.b32.xlu0 %v2056_v29, %s1891_s21  ;;  %385 = vrot.lane.b32.xlu1 %v2048_v26, %s1892_s22 }
 0x2f8   :  { %383 = vrot.lane.b32.xlu0 %v2050_v28, %s1892_s22  ;;  %585 = vrot.lane.b32.xlu1 %v2048_v26, %s1893_s23 }
 0x2fc   :  { %583 = vrot.lane.b32.xlu0 %v2050_v28, %s1893_s23 }
 0x36b   :  { %v279_v44 = vpop.xlane.xlu0 %278 }
 0x36c   :  { %v281_v45 = vsub.f32 %v270_v38, %v279_v44  ;;  %v276_v46 = vpop.xlane.xlu1 %275 }
 0x36d   :  { %v280_v47 = vsub.f32 %v265_v40, %v276_v46 }
 0x36e   :  { %v284_v48 = vmul.f32 1.442695, %v281_v45 }
 0x36f   :  { %v282_v49 = vmul.f32 1.442695, %v280_v47  ;;  %v1715_v50 = vpop.permute.xlu0 %1714 }
 0x370   :  { %v1717_v53 = vunpack.i.h.bf16 %v1715_v50  ;;  %v1716_v54 = vunpack.i.l.bf16 %v1715_v50  ;;  %v1725_v57 = vpop.permute.xlu1 %1724 }
 0x371   :  { %1748 = vpow2.f32 %v282_v49  ;;  %v1727_v58 = vunpack.i.h.bf16 %v1725_v57  ;;  %v1726_v59 = vunpack.i.l.bf16 %v1725_v57 }
 0x372   :  { %1750 = vpow2.f32 %v284_v48  ;;  %v1622_v55 = vpack.c.bf16 %v1717_v53, %v1716_v54 }
 0x373   :  { %v1636_v62 = vpack.c.bf16 %v1727_v58, %v1726_v59  ;;  %v384_v63 = vpop.permute.xlu0 %383 }
 0x374   :  { %1623 = vmatprep.subr.bf16.mxu1 %v1622_v55  ;;  %v386_v0 = vpop.permute.xlu1 %385 }
 0x375   :  { %1625 = vmatpush3.bf16.msra.mxu1 %v1622_v55 }
 0x376   :  { %1628 = vmatprep.subr.msk.bf16.mxu1 %vm2062_vm3, %v1626_v56 }
 0x377   :  { %v584_v1 = vpop.permute.xlu0 %583 }
 0x378   :  { %v586_v2 = vpop.permute.xlu1 %585 }
 0x37b   :  { %v2088_v60 = vpop.eup %1748 }
 0x37c   :  { %v2090_v61 = vpop.eup %1750  ;;  %1514 = vmatprep.mubr.msk.f32.mxu1 %vm273_vm4, %v2088_v60 }
 0x37d   :  { %1515 = vmatmul.mubr.msk.f32.vlgmr.msra.gmra.mrb[2].mxu1 %vm273_vm4, %v2090_v61 }
 0x37e   :  { %1631 = vmatpush3.bf16.xpose.msk.msra.mxu1 %vm2062_vm3, %v1626_v56  ;;  %1521 = vmatprep.mubr.msk.f32.mxu1 %vm189_vm2, %v384_v63 }
 0x37f   :  { %1638 = vmatprep.subr.msk.bf16.mxu1 %vm2062_vm3, %v1636_v62 }
 0x385   :  { %1522 = vmatmul.mubr.msk.f32.vlgmr.msra.gmra.mrb[4].mxu1 %vm189_vm2, %v386_v0 }
 0x386   :  { %1641 = vmatpush3.bf16.xpose.msk.msra.mxu1 %vm2062_vm3, %v1636_v62  ;;  %1535 = vmatprep.mubr.msk.f32.mxu1 %vm189_vm2, %v584_v1 }
 0x38d   :  { %1536 = vmatmul.mubr.msk.f32.vlgmr.msra.gmra.mrb[6].mxu1 %vm189_vm2, %v586_v2 }
 0x450   :  { %v2106_v3 = vpop.f32.mrb[2].mxu1 }
 0x451   :  { %v2108_v4 = vpop.f32.mrb[3].mxu1 }
 0x458   :  { %v1523_v5 = vpop.f32.mrb[4].mxu1 }
 0x459   :  { %v465_v6 = vpop.f32.mrb[5].mxu1  ;;  %v471_v13 = vadd.f32 %v1523_v5, %v2072_v35 }
 0x45a   :  { %v466_v15 = vadd.f32 %v465_v6, %v2074_v36 }
 0x45b   :  { %v477_v16 = vsel %vm273_vm4, %v471_v13, -inf }
 0x45c   :  { %v474_v18 = vsel %vm273_vm4, %v466_v15, -inf }
 0x460   :  { %v1537_v7 = vpop.f32.mrb[6].mxu1 }
 0x461   :  { %v671_v8 = vadd.f32 %v1537_v7, %v2072_v35  ;;  %v665_v9 = vpop.f32.mrb[7].mxu1 }
 0x462   :  { %v666_v10 = vadd.f32 %v665_v9, %v2074_v36 }
 0x463   :  { %v677_v11 = vsel %vm273_vm4, %v671_v8, -inf }
 0x464   :  { %678 = vmax.xlane.f32.xlu1 %v677_v11  ;;  %v674_v12 = vsel %vm273_vm4, %v666_v10, -inf }
 0x465   :  { %675 = vmax.xlane.f32.xlu0 %v674_v12 }
 0x475   :  { %1734 = vrot.lane.b32.xlu1 %v2056_v29, %s1894_s24 }
 0x479   :  { %785 = vrot.lane.b32.xlu1 %v2048_v26, %s1895_s25 }
 0x47b   :  { %1729 = vrot.lane.b32.xlu0 %v2056_v29, %s1896_s26 }
 0x47f   :  { %783 = vrot.lane.b32.xlu0 %v2050_v28, %s1895_s25 }
 0x49d   :  { %478 = vmax.xlane.f32.xlu1 %v477_v16 }
 0x49e   :  { %475 = vmax.xlane.f32.xlu0 %v474_v18 }
 0x4ae   :  { %1739 = vrot.lane.b32.xlu1 %v2056_v29, %s1897_s27 }
 0x4f1   :  { %v679_v19 = vpop.xlane.xlu1 %678 }
 0x4f2   :  { %v681_v20 = vsub.f32 %v671_v8, %v679_v19  ;;  %v676_v22 = vpop.xlane.xlu0 %675 }
 0x4f3   :  { %v680_v24 = vsub.f32 %v666_v10, %v676_v22 }
 0x4f4   :  { %v684_v25 = vmul.f32 1.442695, %v681_v20  ;;  %v289_v20 = vsel %vm273_vm4, %v2090_v61, 0.0 }
 0x4f5   :  { %v682_v26 = vmul.f32 1.442695, %v680_v24  ;;  %v1735_v27 = vpop.permute.xlu1 %1734 }
 0x4f6   :  { %v1737_v28 = vunpack.i.h.bf16 %v1735_v27  ;;  %v1730_v30 = vpop.permute.xlu0 %1729  ;;  %v1736_v31 = vunpack.i.l.bf16 %v1735_v27 }
 0x4f7   :  { %1752 = vpow2.f32 %v682_v26  ;;  %v1732_v32 = vunpack.i.h.bf16 %v1730_v30  ;;  %v1731_v34 = vunpack.i.l.bf16 %v1730_v30 }
 0x4f8   :  { %1754 = vpow2.f32 %v684_v25  ;;  %v1646_v38 = vpack.c.bf16 %v1737_v28, %v1736_v31  ;;  %v286_v25 = vsel %vm273_vm4, %v2088_v60, 0.0 }
 0x4f9   :  { %v1642_v37 = vpack.c.bf16 %v1732_v32, %v1731_v34  ;;  %v786_v42 = vpop.permute.xlu1 %785 }
 0x4fa   :  { %v784_v41 = vpop.permute.xlu0 %783 }
 0x4fb   :  { %1643 = vmatprep.subr.bf16.mxu1 %v1642_v37 }
 0x4fc   :  { %1645 = vmatpush3.bf16.msra.mxu1 %v1642_v37 }
 0x4fd   :  { %1648 = vmatprep.subr.msk.bf16.mxu1 %vm2062_vm3, %v1646_v38 }
 0x501   :  { %v1753_v39 = vpop.eup %1752 }
 0x502   :  { %v1755_v40 = vpop.eup %1754  ;;  %1542 = vmatprep.mubr.msk.f32.mxu1 %vm273_vm4, %v1753_v39  ;;  %v686_v55 = vsel %vm273_vm4, %v1753_v39, 0.0  ;;  %v1014_v39 = vld [vmem:[%s2247_s3] sm:$0xff] }
 0x503   :  { %1543 = vmatmul.mubr.msk.f32.vlgmr.msra.gmra.mrb[8].mxu1 %vm273_vm4, %v1755_v40  ;;  %v689_v7 = vsel %vm273_vm4, %v1755_v40, 0.0  ;;  %v1015_v40 = vld [vmem:[%s2247_s3 + $0x8] sm:$0xff] }
 0x504   :  { %1549 = vmatprep.mubr.msk.f32.mxu1 %vm189_vm2, %v784_v41  ;;  %v1016_v41 = vld [vmem:[%s2247_s3 + $0x10] sm:$0xff] }
 0x505   :  { %1651 = vmatpush3.bf16.xpose.msk.msra.mxu1 %vm2062_vm3, %v1646_v38 }
 0x50c   :  { %1550 = vmatmul.mubr.msk.f32.vlgmr.msra.gmra.mrb[10].mxu1 %vm189_vm2, %v786_v42  ;;  %v1656_v42 = vpack.c.bf16 %v1015_v40, %v1014_v39  ;;  %v1238_v39 = vld [vmem:[%s2249_s5 + $0x18] sm:$0xff] }
 0x52a   :  { %v479_v43 = vpop.xlane.xlu1 %478 }
 0x52b   :  { %v481_v44 = vsub.f32 %v471_v13, %v479_v43  ;;  %v476_v45 = vpop.xlane.xlu0 %475  ;;  %v1017_v43 = vld [vmem:[%s2247_s3 + $0x18] sm:$0xff] }
 0x52c   :  { %v480_v46 = vsub.f32 %v466_v15, %v476_v45 }
 0x52d   :  { %v484_v47 = vmul.f32 1.442695, %v481_v44  ;;  %v1660_v44 = vpack.c.bf16 %v1017_v43, %v1016_v41  ;;  %v1239_v41 = vld [vmem:[%s2249_s5 + $0x20] sm:$0xff] }
 0x52e   :  { %v482_v48 = vmul.f32 1.442695, %v480_v46  ;;  %v1740_v49 = vpop.permute.xlu1 %1739 }
 0x52f   :  { %v1742_v50 = vunpack.i.h.bf16 %v1740_v49  ;;  %v1741_v51 = vunpack.i.l.bf16 %v1740_v49 }
 0x530   :  { %1756 = vpow2.f32 %v482_v48 }
 0x531   :  { %1758 = vpow2.f32 %v484_v47  ;;  %v1632_v52 = vpack.c.bf16 %v1742_v50, %v1741_v51 }
 0x533   :  { %1633 = vmatprep.subr.bf16.mxu0 %v1632_v52 }
 0x534   :  { %1635 = vmatpush3.bf16.msra.mxu0 %v1632_v52 }
 0x53a   :  { %v1757_v53 = vpop.eup %1756 }
 0x53b   :  { %v1759_v33 = vpop.eup %1758  ;;  %1528 = vmatprep.mubr.msk.f32.mxu0 %vm273_vm4, %v1757_v53  ;;  %v486_v54 = vsel %vm273_vm4, %v1757_v53, 0.0 }
 0x53c   :  { %1529 = vmatmul.mubr.msk.f32.vlgmr.msra.gmra.mrb[2].mxu0 %vm273_vm4, %v1759_v33  ;;  %487 = vadd.xlane.f32.xlu1 %v486_v54  ;;  %v489_v6 = vsel %vm273_vm4, %v1759_v33, 0.0 }
 0x540   :  { %687 = vadd.xlane.f32.xlu1 %v686_v55 }
 0x5c9   :  { %v488_v24 = vpop.xlane.xlu1 %487 }
 0x5cd   :  { %v688_v26 = vpop.xlane.xlu1 %687 }
 0x5d6   :  { %v2135_v56 = vpop.f32.mrb[8].mxu1 }
 0x5d7   :  { %v770_v57 = vpop.f32.mrb[9].mxu1 }
 0x5df   :  { %v1551_v58 = vpop.f32.mrb[10].mxu1 }
 0x5e0   :  { %v871_v59 = vadd.f32 %v1551_v58, %v2072_v35  ;;  %v865_v62 = vpop.f32.mrb[11].mxu1 }
 0x5e1   :  { %v866_v63 = vadd.f32 %v865_v62, %v2074_v36 }
 0x5e2   :  { %v877_v0 = vsel %vm273_vm4, %v871_v59, -inf }
 0x5e3   :  { %878 = vmax.xlane.f32.xlu0 %v877_v0  ;;  %v874_v1 = vsel %vm273_vm4, %v866_v63, -inf }
 0x5e7   :  { %875 = vmax.xlane.f32.xlu0 %v874_v1 }
 0x5fd   :  { %1744 = vrot.lane.b32.xlu0 %v2056_v29, %s1898_s7 }
 0x60f   :  { %v1530_v2 = vpop.f32.mrb[2].mxu0 }
 0x610   :  { %v570_v5 = vpop.f32.mrb[3].mxu0 }
 0x61c   :  { %490 = vadd.xlane.f32.xlu0 %v489_v6 }
 0x620   :  { %690 = vadd.xlane.f32.xlu0 %v689_v7 }
 0x670   :  { %v879_v35 = vpop.xlane.xlu0 %878 }
 0x671   :  { %v881_v8 = vsub.f32 %v871_v59, %v879_v35 }
 0x673   :  { %v884_v36 = vmul.f32 1.442695, %v881_v8 }
 0x674   :  { %v876_v9 = vpop.xlane.xlu0 %875 }
 0x675   :  { %1760 = vpow2.f32 %v884_v36  ;;  %v880_v10 = vsub.f32 %v866_v63, %v876_v9 }
 0x677   :  { %v882_v11 = vmul.f32 1.442695, %v880_v10 }
 0x678   :  { %v1745_v12 = vpop.permute.xlu0 %1744 }
 0x679   :  { %1762 = vpow2.f32 %v882_v11  ;;  %v1747_v13 = vunpack.i.h.bf16 %v1745_v12  ;;  %v1746_v15 = vunpack.i.l.bf16 %v1745_v12 }
 0x67a   :  { %1764 = vrcp.f32 %v488_v24 }
 0x67b   :  { %v1652_v29 = vpack.c.bf16 %v1747_v13, %v1746_v15  ;;  %1766 = vrcp.f32 %v688_v26 }
 0x67d   :  { %1653 = vmatprep.subr.bf16.mxu0 %v1652_v29 }
 0x67e   :  { %1655 = vmatpush3.bf16.msra.mxu0 %v1652_v29 }
 0x67f   :  { %v1761_v16 = vpop.eup %1760  ;;  %1657 = vmatprep.subr.bf16.mxu0 %v1656_v42 }
 0x680   :  { %v889_v18 = vsel %vm273_vm4, %v1761_v16, 0.0 }
 0x681   :  { %890 = vadd.xlane.f32.xlu0 %v889_v18 }
 0x683   :  { %v1763_v19 = vpop.eup %1762 }
 0x684   :  { %1556 = vmatprep.mubr.msk.f32.mxu0 %vm273_vm4, %v1763_v19  ;;  %v886_v22 = vsel %vm273_vm4, %v1763_v19, 0.0  ;;  %v1765_v27 = vpop.eup %1764 }
 0x685   :  { %290 = vadd.xlane.f32.xlu0 %v289_v20  ;;  %887 = vadd.xlane.f32.xlu1 %v886_v22  ;;  %v581_v28 = vmul.f32 %v1765_v27, %v570_v5  ;;  %v1767_v30 = vpop.eup %1766 }
 0x686   :  { %1557 = vmatmul.mubr.msk.f32.vlgmr.msra.gmra.mrb[4].mxu0 %vm273_vm4, %v1761_v16  ;;  %v781_v61 = vmul.f32 %v1767_v30, %v770_v57 }
 0x687   :  { %1659 = vmatpush3.bf16.msra.mxu0 %v1656_v42  ;;  %v1240_v42 = vld [vmem:[%s2249_s5 + $0x28] sm:$0xff] }
 0x688   :  { %1661 = vmatprep.subr.bf16.mxu0 %v1660_v44  ;;  %v1680_v43 = vpack.c.bf16 %v1240_v42, %v1239_v41 }
 0x689   :  { %287 = vadd.xlane.f32.xlu1 %v286_v25 }
 0x68b   :  { %1663 = vmatpush3.bf16.msra.mxu0 %v1660_v44 }
 0x69a   :  { %985 = vrot.lane.b32.xlu1 %v581_v28, %s1885_s18  ;;  %v1145_v28 = vld [vmem:[#allocation5 + $0x8] sm:$0xff] }
 0x69e   :  { %993 = vrot.lane.b32.xlu1 %v781_v61, %s1899_s29  ;;  %v1146_v61 = vld [vmem:[#allocation5 + $0x10] sm:$0xff] }
 0x6a9   :  { %v491_v31 = vpop.xlane.xlu0 %490 }
 0x6aa   :  { %1768 = vrcp.f32 %v491_v31  ;;  %v1147_v31 = vld [vmem:[#allocation5 + $0x18] sm:$0xff] }
 0x6ad   :  { %v691_v32 = vpop.xlane.xlu0 %690 }
 0x6ae   :  { %1770 = vrcp.f32 %v691_v32  ;;  %v1668_v32 = vpack.c.bf16 %v1147_v31, %v1146_v61 }
 0x6b4   :  { %v1769_v34 = vpop.eup %1768 }
 0x6b5   :  { %v582_v37 = vmul.f32 %v1769_v34, %v1530_v2  ;;  %v1235_v34 = vld [vmem:[%s2249_s5] sm:$0xff] }
 0x6b7   :  { %987 = vrot.lane.b32.xlu0 %v582_v37, %s1885_s18  ;;  %v1236_v37 = vld [vmem:[%s2249_s5 + $0x8] sm:$0xff] }
 0x6b8   :  { %v1771_v60 = vpop.eup %1770 }
 0x6b9   :  { %v782_v38 = vmul.f32 %v1771_v60, %v2135_v56  ;;  %v1237_v60 = vld [vmem:[%s2249_s5 + $0x10] sm:$0xff] }
 0x6ba   :  { %v1676_v40 = vpack.c.bf16 %v1238_v39, %v1237_v60  ;;  %v1358_v60 = vsub.s32 6, %v2039_v21 }
 0x6bb   :  { %995 = vrot.lane.b32.xlu1 %v782_v38, %s1899_s29  ;;  %v1672_v38 = vpack.c.bf16 %v1236_v37, %v1235_v34 }
 0x6bc   :  { %v1359_v39 = vrot.slane %v2045_v23, %v1358_v60 }
 0x6bd   :  { %1673 = vmatprep.subr.bf16.mxu0 %v1672_v38 }
 0x70e   :  { %v891_v45 = vpop.xlane.xlu0 %890 }
 0x70f   :  { %1772 = vrcp.f32 %v891_v45 }
 0x712   :  { %v888_v46 = vpop.xlane.xlu1 %887  ;;  %v291_v33 = vpop.xlane.xlu0 %290 }
 0x713   :  { %1774 = vrcp.f32 %v888_v46 }
 0x716   :  { %v288_v53 = vpop.xlane.xlu1 %287 }
 0x717   :  { %1776 = vrcp.f32 %v288_v53 }
 0x718   :  { %1778 = vrcp.f32 %v291_v33 }
 0x719   :  { %v1773_v47 = vpop.eup %1772 }
 0x71a   :  { %v986_v54 = vpop.permute.xlu1 %985 }
 0x71d   :  { %v1775_v49 = vpop.eup %1774 }
 0x71e   :  { %v994_v56 = vpop.permute.xlu1 %993 }
 0x721   :  { %v1777_v55 = vpop.eup %1776 }
 0x722   :  { %v381_v57 = vmul.f32 %v1777_v55, %v2108_v4  ;;  %v1779_v58 = vpop.eup %1778  ;;  %v1020_v4 = vsub.s32 1, %v2039_v21 }
 0x723   :  { %v382_v0 = vmul.f32 %v1779_v58, %v2106_v3 }
 0x724   :  { %v1007_v63 = vsel %vm189_vm2, %v381_v57, %v986_v54  ;;  %v1021_v36 = vrot.slane %v2045_v23, %v1020_v4 }
 0x725   :  { %v1009_v2 = vsel %vm273_vm4, %v1007_v63, %v994_v56  ;;  %v1241_v63 = vld [vmem:[%s2249_s5 + $0x30] sm:$0xff] }
 0x729   :  { %v988_v62 = vpop.permute.xlu0 %987 }
 0x72a   :  { %v1008_v5 = vsel %vm189_vm2, %v382_v0, %v988_v62  ;;  %v1242_v0 = vld [vmem:[%s2249_s5 + $0x38] sm:$0xff]  ;;  %s1901_s5 = smov [#allocation8]  }
 0x72b   :  { %s1375_s7 = sshll.u32 %s1901_s5, 4  ;;  %s1376_s7 = int_to_ptr.vmem [resolvable:$true] %s1375_s7 }
 0x72c   :  { %s1854_s29 = scalar_lea.vmem %s1376_s7, 256  ;;  %p1859_p11 = scmp.lt.s32.totalorder %s1376_s7, %s1376_s7 }
 0x72d   :  { %v996_v59 = vpop.permute.xlu1 %995  ;;  %p1855_p10 = scmp.ne.s32.totalorder %s1376_s7, %s1854_s29  ;;  %p1860_p12 = scmp.lt.s32.totalorder %s1854_s29, %s1854_s29 }
 0x72e   :  { %v1010_v7 = vsel %vm273_vm4, %v1008_v5, %v996_v59 }
 0x72f   :  { %p1861_p13 = por %p1860_p12, %p1859_p11 }
 0x731   :  { %p1862_p0 = pnand %p1861_p13, %p1855_p10 }
 0x759   :  { %v1558_v48 = vpop.f32.mrb[4].mxu0 }
 0x75a   :  { %v982_v50 = vmul.f32 %v1773_v47, %v1558_v48  ;;  %v970_v51 = vpop.f32.mrb[5].mxu0 }
 0x75b   :  { %v981_v52 = vmul.f32 %v1775_v49, %v970_v51  ;;  %v1140_v51 = vsub.s32 5, %v2039_v21 }
 0x75c   :  { %1003 = vrot.lane.b32.xlu1 %v982_v50, %s1900_s15  ;;  %v1134_v50 = vsub.s32 4, %v2039_v21 }
 0x75d   :  { %1001 = vrot.lane.b32.xlu0 %v981_v52, %s1900_s15  ;;  %v1141_v54 = vrot.slane %v2045_v23, %v1140_v51 }
 0x75e   :  { %v1135_v52 = vrot.slane %v2045_v23, %v1134_v50 }
 0x7ce   :  { %v1004_v1 = vpop.permute.xlu1 %1003 }
 0x7cf   :  { %v1002_v6 = vpop.permute.xlu0 %1001  ;;  %v1013_v8 = vsel %vm1011_vm5, %v1010_v7, %v1004_v1  ;;  %v1684_v1 = vpack.c.bf16 %v1242_v0, %v1241_v63 }
 0x7d0   :  { %v1012_v35 = vsel %vm1011_vm5, %v1009_v2, %v1002_v6  ;;  %v1150_v2 = vsub.s32 2, %v2039_v21 }
 0x7d1   :  { %1567 = vmatprep.mubr.msk.f32.mxu0 %vm86_vm0, %v1012_v35 }
 0x7d2   :  { %1568 = vmatmul.mubr.msk.f32.vlgmr.msra.gmra.mrb[6].mxu0 %vm86_vm0, %v1013_v8  ;;  %v1151_v5 = vrot.slane %v2045_v23, %v1150_v2 }
 0x7d3   :  { %1675 = vmatpush3.bf16.msra.mxu0 %v1672_v38  ;;  %v1364_v38 = vsub.s32 7, %v2039_v21 }
 0x7d4   :  { %1677 = vmatprep.subr.bf16.mxu0 %v1676_v40 }
 0x7d7   :  { %1679 = vmatpush3.bf16.msra.mxu0 %v1676_v40 }
 0x7d8   :  { %1681 = vmatprep.subr.bf16.mxu0 %v1680_v43 }
 0x7db   :  { %1683 = vmatpush3.bf16.msra.mxu0 %v1680_v43  ;;  %v1365_v43 = vrot.slane %v2045_v23, %v1364_v38 }
 0x7dc   :  { %1685 = vmatprep.subr.bf16.mxu0 %v1684_v1 }
 0x7df   :  { %1687 = vmatpush3.bf16.msra.mxu0 %v1684_v1 }
 0x8a5   :  { %v1569_v3 = vpop.f32.mrb[6].mxu0 }
 0x8a6   :  { %v1100_v9 = vadd.f32 %v1569_v3, %v1021_v36  ;;  %v1094_v10 = vpop.f32.mrb[7].mxu0  ;;  %v1245_v3 = vsub.s32 3, %v2039_v21 }
 0x8a7   :  { %v1095_v11 = vadd.f32 %v1094_v10, %v1021_v36 }
 0x8a8   :  { %v1104_v12 = vadd.f32 %v1100_v9, %v2034_v17  ;;  %v1246_v9 = vrot.slane %v2045_v23, %v1245_v3 }
 0x8a9   :  { %v1103_v13 = vadd.f32 %v1095_v11, %v2026_v14  ;;  %v1144_v14 = vld [vmem:[#allocation5] sm:$0xff] }
 0x8aa   :  { %v1108_v15 = vsel %vm86_vm0, %v1104_v12, 0.0  ;;  %v1664_v30 = vpack.c.bf16 %v1145_v28, %v1144_v14 }
 0x8ab   :  { %1109 = vadd.xlane.f32.xlu1 %v1108_v15  ;;  %v1105_v29 = vsel %vm86_vm0, %v1103_v13, 0.0 }
 0x8ac   :  { %1106 = vadd.xlane.f32.xlu0 %v1105_v29  ;;  %1665 = vmatprep.subr.bf16.mxu1 %v1664_v30 }
 0x8ad   :  { %1667 = vmatpush3.bf16.msra.mxu1 %v1664_v30 }
 0x8ae   :  { %1669 = vmatprep.subr.bf16.mxu1 %v1668_v32 }
 0x8b1   :  { %1671 = vmatpush3.bf16.msra.mxu1 %v1668_v32 }
 0x938   :  { %v1110_v16 = vpop.xlane.xlu1 %1109 }
 0x939   :  { %v1113_v18 = vmul.f32 0.03125, %v1110_v16  ;;  %v1107_v19 = vpop.xlane.xlu0 %1106 }
 0x93a   :  { %v1112_v20 = vmul.f32 0.03125, %v1107_v19 }
 0x93b   :  { %v1115_v22 = vsub.f32 %v1104_v12, %v1113_v18 }
 0x93c   :  { %v1114_v24 = vsub.f32 %v1103_v13, %v1112_v20 }
 0x93d   :  { %v1117_v27 = vmul.f32 %v1115_v22, %v1115_v22 }
 0x93e   :  { %v1116_v25 = vmul.f32 %v1114_v24, %v1114_v24 }
 0x93f   :  { %v1121_v17 = vsel %vm86_vm0, %v1117_v27, 0.0 }
 0x940   :  { %v1118_v26 = vsel %vm86_vm0, %v1116_v25, 0.0 }
 0x941   :  { %1119 = vadd.xlane.f32.xlu0 %v1118_v26 }
 0x945   :  { %1122 = vadd.xlane.f32.xlu0 %v1121_v17 }
 0x9ce   :  { %v1120_v44 = vpop.xlane.xlu0 %1119 }
 0x9cf   :  { %v1124_v45 = vmul.f32 0.03125, %v1120_v44 }
 0x9d1   :  { %v1126_v46 = vadd.f32 1e-05, %v1124_v45 }
 0x9d2   :  { %v1123_v47 = vpop.xlane.xlu0 %1122 }
 0x9d3   :  { %1780 = vrsqrt.f32 %v1126_v46  ;;  %v1125_v48 = vmul.f32 0.03125, %v1123_v47 }
 0x9d5   :  { %v1127_v49 = vadd.f32 1e-05, %v1125_v48 }
 0x9d7   :  { %1782 = vrsqrt.f32 %v1127_v49 }
 0x9dd   :  { %v1781_v53 = vpop.eup %1780 }
 0x9de   :  { %v1130_v33 = vmul.f32 %v1781_v53, %v1114_v24 }
 0x9e0   :  { %v1136_v55 = vmul.f32 %v1135_v52, %v1130_v33 }
 0x9e1   :  { %v1783_v56 = vpop.eup %1782 }
 0x9e2   :  { %v1131_v57 = vmul.f32 %v1783_v56, %v1115_v22  ;;  %v1142_v58 = vadd.f32 %v1141_v54, %v1136_v55 }
 0x9e4   :  { %v1137_v59 = vmul.f32 %v1135_v52, %v1131_v57  ;;  %1578 = vmatprep.mubr.msk.f32.mxu1 %vm86_vm0, %v1142_v58 }
 0x9e6   :  { %v1143_v62 = vadd.f32 %v1141_v54, %v1137_v59 }
 0x9e8   :  { %1579 = vmatmul.mubr.msk.f32.vlgmr.msra.gmra.mrb[12].mxu1 %vm86_vm0, %v1143_v62 }
 0xabb   :  { %v1580_v6 = vpop.f32.mrb[12].mxu1 }
 0xabc   :  { %v1230_v7 = vadd.f32 %v1580_v6, %v1151_v5  ;;  %v1224_v35 = vpop.f32.mrb[13].mxu1 }
 0xabd   :  { %v1225_v8 = vadd.f32 %v1224_v35, %v1151_v5 }
 0xabe   :  { %v1234_v36 = vmax.f32 %v1230_v7, 0.0 }
 0xabf   :  { %v1233_v4 = vmax.f32 %v1225_v8, 0.0 }
 0xac1   :  { %1597 = vmatprep.mubr.msk.f32.mxu0 %vm101_vm1, %v1233_v4 }
 0xac2   :  { %1598 = vmatmul.mubr.msk.f32.vlgmr.msra.gmra.mrb[8].mxu0 %vm101_vm1, %v1234_v36 }
 0xb95   :  { %v1599_v10 = vpop.f32.mrb[8].mxu0 }
 0xb96   :  { %v1325_v11 = vadd.f32 %v1599_v10, %v1246_v9  ;;  %v1319_v12 = vpop.f32.mrb[9].mxu0 }
 0xb97   :  { %v1320_v13 = vadd.f32 %v1319_v12, %v1246_v9 }
 0xb98   :  { %v1329_v15 = vadd.f32 %v1325_v11, %v1143_v62 }
 0xb99   :  { %v1328_v29 = vadd.f32 %v1320_v13, %v1142_v58 }
 0xb9a   :  { %v1333_v16 = vsel %vm86_vm0, %v1329_v15, 0.0 }
 0xb9b   :  { %1334 = vadd.xlane.f32.xlu0 %v1333_v16  ;;  %v1330_v18 = vsel %vm86_vm0, %v1328_v29, 0.0 }
 0xb9c   :  { %1331 = vadd.xlane.f32.xlu1 %v1330_v18 }
 0xc28   :  { %v1335_v19 = vpop.xlane.xlu0 %1334 }
 0xc29   :  { %v1337_v20 = vmul.f32 0.03125, %v1335_v19  ;;  %v1332_v22 = vpop.xlane.xlu1 %1331 }
 0xc2a   :  { %v1336_v24 = vmul.f32 0.03125, %v1332_v22 }
 0xc2b   :  { %v1339_v25 = vsub.f32 %v1329_v15, %v1337_v20 }
 0xc2c   :  { %v1338_v26 = vsub.f32 %v1328_v29, %v1336_v24 }
 0xc2d   :  { %v1341_v27 = vmul.f32 %v1339_v25, %v1339_v25 }
 0xc2e   :  { %v1340_v17 = vmul.f32 %v1338_v26, %v1338_v26 }
 0xc2f   :  { %v1345_v14 = vsel %vm86_vm0, %v1341_v27, 0.0 }
 0xc30   :  { %1346 = vadd.xlane.f32.xlu0 %v1345_v14  ;;  %v1342_v28 = vsel %vm86_vm0, %v1340_v17, 0.0 }
 0xc31   :  { %1343 = vadd.xlane.f32.xlu1 %v1342_v28 }
 0xcbd   :  { %v1347_v30 = vpop.xlane.xlu0 %1346 }
 0xcbe   :  { %v1349_v61 = vmul.f32 0.03125, %v1347_v30  ;;  %v1344_v31 = vpop.xlane.xlu1 %1343 }
 0xcbf   :  { %v1348_v32 = vmul.f32 0.03125, %v1344_v31 }
 0xcc0   :  { %v1351_v34 = vadd.f32 1e-05, %v1349_v61 }
 0xcc1   :  { %v1350_v37 = vadd.f32 1e-05, %v1348_v32 }
 0xcc2   :  { %1784 = vrsqrt.f32 %v1351_v34 }
 0xcc3   :  { %1786 = vrsqrt.f32 %v1350_v37 }
 0xccc   :  { %v1785_v40 = vpop.eup %1784 }
 0xccd   :  { %v1787_v41 = vpop.eup %1786  ;;  %v1355_v42 = vmul.f32 %v1785_v40, %v1339_v25 }
 0xcce   :  { %v1354_v44 = vmul.f32 %v1787_v41, %v1338_v26 }
 0xccf   :  { %v1361_v45 = vmul.f32 %v1359_v39, %v1355_v42 }
 0xcd0   :  { %v1360_v46 = vmul.f32 %v1359_v39, %v1354_v44 }
 0xcd1   :  { %v1367_v47 = vadd.f32 %v1365_v43, %v1361_v45 }
 0xcd2   :  { %v1366_v48 = vadd.f32 %v1365_v43, %v1360_v46 }
 0xcd3   :  { %1369 = vst.msk [vmem:[#allocation8 + $0x8] sm:$0xff] %vm86_vm0, %v1367_v47 }
 0xcd4   :  { %1368 = vst.msk [vmem:[#allocation8] sm:$0xff] %vm86_vm0, %v1366_v48 }
 0xcd5   :  { %1865 = shalt.err (!%p1862_p0)
}
 0xcd6   :  { %s1866_s9 = scalar_lea.hbm %s2252_s8, 256 }
 0xcd7   :  { %p1867_p1 = scmp.ne.s32.totalorder %s2252_s8, %s1866_s9  ;;  %p1870_p2 = scmp.lt.u32.totalorder %s1866_s9, %s2252_s8 }
 0xcd9   :  { %p1872_p3 = pnand %p1870_p2, %p1867_p1 }
 0xcdb   :  { %1875 = shalt.err (!%p1872_p3)
}
 0xcdc   :  { %1381 = dma.vmem_to_hbm [thread:$0]  %s1376_s7, 256, %s2252_s8, [#allocation4], %s1884_s17, %s1884_s17, %s1885_s18  }
 0xcdd   :  { %1880 = dma.done.wait [#allocation4], 256  }
 0xcde   :  { %1881 = vsyncadd [#allocation4], 4294967040 }
 0xcdf   :  { %1385 = vsyncpa [#allocation3], 1 }
 0xce0   :  { %1386 = vsyncpa [#allocation6], 1 }
 0xce1   :  { %1387 = vsyncpa [#allocation4], 1 }

</bundles_post_ra>
